<compile_context>
chip_gen: v5e
topology: v5e:2x2
jax: 0.10.0
libtpu: 0.0.40
codegen_flags: <defaults>
</compile_context>

<pallas_src>
import jax
import jax.numpy as jnp
from jax.experimental import pallas as pl
from jax.experimental.pallas import tpu as pltpu


def _round_up(n: int, m: int) -> int:
    return ((n + m - 1) // m) * m


def outcome_net_kernel(x_ref, w1_ref, b1_ref, w2_ref, b2_ref, o_ref):
    # Two MXU matmuls (bf16 in, f32 accumulate) + VPU bias-add / ReLU in f32.
    x = x_ref[...]                                                    # (TM, D_in) bf16
    h = jnp.dot(x, w1_ref[...], preferred_element_type=jnp.float32)  # (TM, H) f32
    h = jnp.maximum(h + b1_ref[...], 0.0)                            # f32 VPU work
    out = jnp.dot(h.astype(jnp.bfloat16), w2_ref[...],
                  preferred_element_type=jnp.float32)                # (TM, D_out) f32
    o_ref[...] = jnp.maximum(out + b2_ref[...], 0.0)


def outcome_net_forward(x, w1, b1, w2, b2, *, block_rows=512):
    """x: (B, D_in); w1: (D_in, H); b1: (1, H); w2: (H, D_out); b2: (1, D_out)."""
    B, d_in = x.shape
    hidden = w1.shape[1]
    d_out = w2.shape[1]

    # Row tile: multiple of 8 sublanes, at most `block_rows`, never larger than
    # the (padded) batch.  Pad B up to a multiple of the tile; slice afterwards.
    tm = min(block_rows, _round_up(B, 8))
    b_pad = _round_up(B, tm)
    x = x.astype(jnp.bfloat16)
    if b_pad != B:
        x = jnp.pad(x, ((0, b_pad - B), (0, 0)))

    w1b = w1.astype(jnp.bfloat16)
    w2b = w2.astype(jnp.bfloat16)

    grid = (b_pad // tm,)

    flops = 2 * b_pad * (d_in * hidden + hidden * d_out)
    bytes_accessed = (
        b_pad * d_in * 2          # x (bf16)
        + b_pad * d_out * 4       # out (f32)
        + d_in * hidden * 2       # w1 (bf16)
        + hidden * d_out * 2      # w2 (bf16)
        + hidden * 4 + d_out * 4  # biases (f32)
    )

    out = pl.pallas_call(
        outcome_net_kernel,
        out_shape=jax.ShapeDtypeStruct((b_pad, d_out), jnp.float32),
        grid=grid,
        in_specs=[
            pl.BlockSpec((tm, d_in), lambda i: (i, 0)),       # x tile, pipelined
            pl.BlockSpec((d_in, hidden), lambda i: (0, 0)),   # w1, VMEM-resident
            pl.BlockSpec((1, hidden), lambda i: (0, 0)),      # b1
            pl.BlockSpec((hidden, d_out), lambda i: (0, 0)),  # w2
            pl.BlockSpec((1, d_out), lambda i: (0, 0)),       # b2
        ],
        out_specs=pl.BlockSpec((tm, d_out), lambda i: (i, 0)),
        compiler_params=pltpu.CompilerParams(
            dimension_semantics=("parallel",),
        ),
        cost_estimate=pl.CostEstimate(
            flops=flops, transcendentals=0, bytes_accessed=bytes_accessed
        ),
    )(x, w1b, b1, w2b, b2)

    return out[:B]


def init_params(key, input_dim_outcome, output_rep_dim, hidden_dim=32):
    """Deterministic parameter init mirroring nn.Linear shapes.

    PyTorch nn.Linear(in, out) has weight (out, in) and bias (out,).
    We store the transposed weight (in, out) for the kernel.
    """
    k1, k2, k3, k4 = jax.random.split(key, 4)
    lim1 = 1.0 / jnp.sqrt(jnp.float32(input_dim_outcome))
    lim2 = 1.0 / jnp.sqrt(jnp.float32(hidden_dim))
    w1 = jax.random.uniform(k1, (input_dim_outcome, hidden_dim), jnp.float32, -lim1, lim1)
    b1 = jax.random.uniform(k2, (1, hidden_dim), jnp.float32, -lim1, lim1)
    w2 = jax.random.uniform(k3, (hidden_dim, output_rep_dim), jnp.float32, -lim2, lim2)
    b2 = jax.random.uniform(k4, (1, output_rep_dim), jnp.float32, -lim2, lim2)
    return w1, b1, w2, b2


if __name__ == "__main__":
    input_dim_outcome = 16
    hidden_dim = 32
    output_rep_dim = 8

    key = jax.random.PRNGKey(0)
    kx, kx2, kp = jax.random.split(key, 3)
    w1, b1, w2, b2 = init_params(kp, input_dim_outcome, output_rep_dim, hidden_dim)

    def ref_fwd(x):
        # Mirrors the kernel's numerics: bf16 matmul operands, f32 accumulation,
        # f32 bias-add / ReLU.
        xb = x.astype(jnp.bfloat16)
        h = jnp.dot(xb, w1.astype(jnp.bfloat16),
                    preferred_element_type=jnp.float32) + b1
        h = jnp.maximum(h, 0.0)
        o = jnp.dot(h.astype(jnp.bfloat16), w2.astype(jnp.bfloat16),
                    preferred_element_type=jnp.float32) + b2
        return jnp.maximum(o, 0.0)

    # Small batch consistent with the module's typical forward.
    x_small = jax.random.normal(kx, (8, input_dim_outcome), jnp.float32)
    out_small = jax.block_until_ready(outcome_net_forward(x_small, w1, b1, w2, b2))
    assert out_small.shape == (8, output_rep_dim)
    assert jnp.allclose(out_small, ref_fwd(x_small), atol=1e-4, rtol=1e-4)

    # Larger, ragged batch exercises the row-tiled grid + padding/slicing path.
    x_big = jax.random.normal(kx2, (1030, input_dim_outcome), jnp.float32)
    out_big = jax.block_until_ready(outcome_net_forward(x_big, w1, b1, w2, b2))
    assert out_big.shape == (1030, output_rep_dim)
    assert jnp.allclose(out_big, ref_fwd(x_big), atol=1e-4, rtol=1e-4)

    print("KERNEL_OK")
</pallas_src>

<mosaic_0001>
module attributes {stable_mosaic.version = 11 : i64} {
  func.func @outcome_net_kernel(%arg0: i32, %arg1: memref<8x16xbf16, #tpu.memory_space<vmem>>, %arg2: memref<16x32xbf16, #tpu.memory_space<vmem>>, %arg3: memref<1x32xf32, #tpu.memory_space<vmem>>, %arg4: memref<32x8xbf16, #tpu.memory_space<vmem>>, %arg5: memref<1x8xf32, #tpu.memory_space<vmem>>, %arg6: memref<8x8xf32, #tpu.memory_space<vmem>>) attributes {dimension_semantics = [#tpu.dimension_semantics<parallel>], iteration_bounds = array<i64: 1>, scalar_prefetch = 0 : i64, scratch_operands = 0 : i64, tpu.core_type = #tpu.core_type<tc>, window_params = [{transform_indices = @transform_0, window_bounds = array<i64: 8, 16>}, {pipeline_mode = #tpu.pipeline_mode<synchronous>, transform_indices = @transform_1, window_bounds = array<i64: 16, 32>}, {pipeline_mode = #tpu.pipeline_mode<synchronous>, transform_indices = @transform_2, window_bounds = array<i64: 1, 32>}, {pipeline_mode = #tpu.pipeline_mode<synchronous>, transform_indices = @transform_3, window_bounds = array<i64: 32, 8>}, {pipeline_mode = #tpu.pipeline_mode<synchronous>, transform_indices = @transform_4, window_bounds = array<i64: 1, 8>}, {transform_indices = @transform_5, window_bounds = array<i64: 8, 8>}]} {
    %c0 = arith.constant 0 : index
    %c0_0 = arith.constant 0 : index
    %0 = vector.load %arg1[%c0, %c0_0] : memref<8x16xbf16, #tpu.memory_space<vmem>>, vector<8x16xbf16>
    %c0_1 = arith.constant 0 : index
    %c0_2 = arith.constant 0 : index
    %1 = vector.load %arg2[%c0_1, %c0_2] : memref<16x32xbf16, #tpu.memory_space<vmem>>, vector<16x32xbf16>
    %cst = arith.constant dense<0.000000e+00> : vector<8x32xf32>
    %2 = tpu.matmul %0, %1, %cst {dimension_numbers = #tpu.dot_dimension_numbers<[1], [0], [0], [1], [0, 0, 1, 1], [], []>} : vector<8x16xbf16>, vector<16x32xbf16>, vector<8x32xf32> -> vector<8x32xf32>
    %c0_3 = arith.constant 0 : index
    %c0_4 = arith.constant 0 : index
    %3 = vector.load %arg3[%c0_3, %c0_4] : memref<1x32xf32, #tpu.memory_space<vmem>>, vector<1x32xf32>
    %4 = vector.broadcast %3 : vector<1x32xf32> to vector<8x32xf32>
    %5 = arith.addf %2, %4 : vector<8x32xf32>
    %cst_5 = arith.constant 0.000000e+00 : f32
    %6 = vector.broadcast %cst_5 : f32 to vector<8x32xf32>
    %7 = arith.maximumf %5, %6 : vector<8x32xf32>
    %8 = arith.truncf %7 : vector<8x32xf32> to vector<8x32xbf16>
    %c0_6 = arith.constant 0 : index
    %c0_7 = arith.constant 0 : index
    %9 = vector.load %arg4[%c0_6, %c0_7] : memref<32x8xbf16, #tpu.memory_space<vmem>>, vector<32x8xbf16>
    %cst_8 = arith.constant dense<0.000000e+00> : vector<8x8xf32>
    %10 = tpu.matmul %8, %9, %cst_8 {dimension_numbers = #tpu.dot_dimension_numbers<[1], [0], [0], [1], [0, 0, 1, 1], [], []>} : vector<8x32xbf16>, vector<32x8xbf16>, vector<8x8xf32> -> vector<8x8xf32>
    %c0_9 = arith.constant 0 : index
    %c0_10 = arith.constant 0 : index
    %11 = vector.load %arg5[%c0_9, %c0_10] : memref<1x8xf32, #tpu.memory_space<vmem>>, vector<1x8xf32>
    %12 = vector.broadcast %11 : vector<1x8xf32> to vector<8x8xf32>
    %13 = arith.addf %10, %12 : vector<8x8xf32>
    %cst_11 = arith.constant 0.000000e+00 : f32
    %14 = vector.broadcast %cst_11 : f32 to vector<8x8xf32>
    %15 = arith.maximumf %13, %14 : vector<8x8xf32>
    %c0_12 = arith.constant 0 : index
    %c0_13 = arith.constant 0 : index
    %16 = vector.load %arg6[%c0_12, %c0_13] : memref<8x8xf32, #tpu.memory_space<vmem>>, vector<8x8xf32>
    tpu.vector_store %arg6[%c0_12, %c0_13], %15 {strides = array<i32>} : memref<8x8xf32, #tpu.memory_space<vmem>>, vector<8x8xf32>,
    return
  }
  func.func @transform_0(%arg0: i32) -> (i32, i32) {
    %c0_i32 = arith.constant 0 : i32
    %c0_i32_0 = arith.constant 0 : i32
    return %arg0, %c0_i32 : i32, i32
  }
  func.func @transform_1(%arg0: i32) -> (i32, i32) {
    %c0_i32 = arith.constant 0 : i32
    %c0_i32_0 = arith.constant 0 : i32
    %c0_i32_1 = arith.constant 0 : i32
    return %c0_i32, %c0_i32_0 : i32, i32
  }
  func.func @transform_2(%arg0: i32) -> (i32, i32) {
    %c0_i32 = arith.constant 0 : i32
    %c0_i32_0 = arith.constant 0 : i32
    %c0_i32_1 = arith.constant 0 : i32
    return %c0_i32, %c0_i32_0 : i32, i32
  }
  func.func @transform_3(%arg0: i32) -> (i32, i32) {
    %c0_i32 = arith.constant 0 : i32
    %c0_i32_0 = arith.constant 0 : i32
    %c0_i32_1 = arith.constant 0 : i32
    return %c0_i32, %c0_i32_0 : i32, i32
  }
  func.func @transform_4(%arg0: i32) -> (i32, i32) {
    %c0_i32 = arith.constant 0 : i32
    %c0_i32_0 = arith.constant 0 : i32
    %c0_i32_1 = arith.constant 0 : i32
    return %c0_i32, %c0_i32_0 : i32, i32
  }
  func.func @transform_5(%arg0: i32) -> (i32, i32) {
    %c0_i32 = arith.constant 0 : i32
    %c0_i32_0 = arith.constant 0 : i32
    return %arg0, %c0_i32 : i32, i32
  }
}

</mosaic_0001>

<bundles_post_ra>
// kernel: tpu_custom_call.1
= control target key start
LH: loop header
LB: loop body
LE: loop exit
PB: predicated region body
PF: predicated region fallthrough
CT: control target
= control target key end

     0   :  { %s208_s0 = inlined_call_operand.vmem [shape: bf16[8,16], index: 0, kind: input, shape index: {}]   ;;  %s209_s1 = inlined_call_operand.vmem [shape: bf16[16,32], index: 1, kind: input, shape index: {}]   ;;  %s210_s2 = inlined_call_operand.vmem [shape: f32[1,32], index: 2, kind: input, shape index: {}]   ;;  %s211_s3 = inlined_call_operand.vmem [shape: bf16[32,8], index: 3, kind: input, shape index: {}]   ;;  %s212_s4 = inlined_call_operand.vmem [shape: f32[1,8], index: 4, kind: input, shape index: {}]   ;;  %s213_s5 = inlined_call_operand.hbm [shape: f32[8,8], index: 5, kind: output, shape index: {}]  }
   0x1   :  { %v124_v0 = vld [vmem:[%s209_s1] sm:$0xff] }
   0x2   :  { %10 = vsyncpa [#allocation3], 0  ;;  %46 = vmatpush.bf16.msra.mxu0 %v124_v0  ;;  %v22_v1 = vld [vmem:[%s208_s0] sm:$0xf]  ;;  %vm35_vm0 = vcmask 130048   ;;  %v126_v2 = vld [vmem:[%s211_s3 + $0x8] sm:$0xff] }
   0x3   :  { %84 = vmatpush.bf16.msra.mxu1 %v126_v2  ;;  %v125_v3 = vld [vmem:[%s211_s3] sm:$0xff]  ;;  %vm74_vm1 = vcmask 261120   ;;  %s156_s28 = smov [#allocation2]   ;;  %s101_s6 = sshll.u32 %s213_s5, 4  ;;  %vm92_vm2 = vcmask 64512   ;;  %s102_s6 = int_to_ptr.hbm [resolvable:$true] %s101_s6 }
   0x4   :  { %v128_v4 = vld [vmem:[%s210_s2] ss:$0 sm:$0xff]  ;;  %s99_s29 = sshll.u32 %s156_s28, 4  ;;  %s100_s29 = int_to_ptr.vmem [resolvable:$true] %s99_s29 }
   0x5   :  { %114 = vmatmul.msk.bf16.vlgmr.msra.gmra.mxu0 %vm35_vm0, %v22_v1  ;;  %v129_v10 = vld [vmem:[%s212_s4] ss:$0 sm:$0xff] }
   0x7   :  { %85 = vmatpush.bf16.msra.mxu1 %v125_v3 }
  0x82   :  { %v48_v5 = vpop.f32.mrf.mxu0 }
  0x83   :  { %v49_v6 = vadd.f32 %v128_v4, %v48_v5 }
  0x85   :  { %v52_v7 = vmax.f32 %v49_v6, 0.0 }
  0x87   :  { %v53_v8 = vpack.c.bf16 %v52_v7, %v52_v7 }
  0x89   :  { %123 = vmatmul.msk.bf16.vlgmr.msra.gmra.mxu1 %vm74_vm1, %v53_v8 }
  0x8a   :  { %v50_v9 = vpop.f32.mrf.mxu0 }
 0x106   :  { %v87_v11 = vpop.f32.mrf.mxu1 }
 0x107   :  { %v88_v12 = vadd.f32 %v129_v10, %v87_v11 }
 0x109   :  { %v91_v13 = vmax.f32 %v88_v12, 0.0 }
 0x10b   :  { %93 = vst.msk [vmem:[#allocation2] sm:$0xff] %vm92_vm2, %v91_v13 }
 0x10c   :  { %104 = dma.vmem_to_hbm [thread:$0]  %s100_s29, 128, %s102_s6, [#allocation3]  }
 0x10e   :  { %v89_v14 = vpop.f32.mrf.mxu1 }
 0x10f   :  { %154 = dma.done.wait [#allocation3], 128  }
 0x110   :  { %155 = vsyncadd [#allocation3], 4294967168 }
 0x111   :  { %109 = vsyncpa [#allocation3], 1 }

</bundles_post_ra>
